<compile_context>
chip_gen: v6e
topology: v6e:2x2x1
jax: 0.10.0
libtpu: 0.0.40
codegen_flags: <defaults>
</compile_context>

<pallas_src>
import jax
import jax.numpy as jnp
from jax.experimental import pallas as pl
from jax.experimental.pallas import tpu as pltpu


def _softplus(x):
    # PyTorch F.softplus semantics (beta=1, threshold=20); clamp exp arg so
    # the untaken branch never produces inf.
    return jnp.where(x > 20.0, x, jnp.log1p(jnp.exp(jnp.minimum(x, 20.0))))


def _make_kernel(fuse):
    """Kernel over one (Bb, C, tt) slab.  Statically unrolled over Bb (<= 8)
    so every matmul is a plain lane-dense 2-D MXU dot (no batched transposes).
    """

    def kernel(x_ref, we_ref, be_ref, wd_ref, bd_ref, rates_ref, z_ref):
        we = we_ref[...]                      # (D, C) f32, resident
        be = be_ref[...]                      # (D, 1)
        wd = wd_ref[...]                      # fused: (C, C)   two-step: (C, D)
        bd = bd_ref[...]                      # (C, 1)
        for bi in range(x_ref.shape[0]):      # static unroll, Bb small
            x = x_ref[bi].astype(jnp.float32)             # (C, tt), math in f32
            z = jnp.dot(we, x, preferred_element_type=jnp.float32) + be
            if fuse:
                # logrates = (W_d @ W_e) x + (W_d b_e + b_d): independent of z.
                lr = jnp.dot(wd, x, preferred_element_type=jnp.float32) + bd
            else:
                lr = jnp.dot(wd, z, preferred_element_type=jnp.float32) + bd
            rates_ref[bi] = _softplus(lr).astype(rates_ref.dtype)
            z_ref[bi] = z.astype(z_ref.dtype)

    return kernel


def _largest_divisor_leq(n, cap):
    return max(d for d in range(1, min(n, cap) + 1) if n % d == 0)


def _choose_tiling(B, T, bytes_per_col, resident_bytes, vmem_budget, max_tile):
    """Pick (Bb, tt): batch block and lane-dense time tile (multiple of 128)."""
    Bb = _largest_divisor_leq(B, 8)
    T128 = pl.cdiv(T, 128) * 128
    tt = min(max_tile, T128)

    def vmem_need(bb, t):
        # double-buffered x + rates + z slabs, plus resident f32 weights
        return resident_bytes + 2 * bb * t * bytes_per_col

    # Fit the VMEM budget: shrink tt first, then the batch block.
    while vmem_need(Bb, tt) > vmem_budget and tt > 128:
        tt = max(128, (tt // 2) // 128 * 128)
    while vmem_need(Bb, tt) > vmem_budget and Bb > 1:
        Bb = _largest_divisor_leq(B, Bb - 1)

    # Megacore (v7x): guarantee >= 2 grid steps; shrink Bb first so the
    # lane-dense time width stays as wide as possible.
    def steps(bb, t):
        return (B // bb) * pl.cdiv(T, t)

    while steps(Bb, tt) < 2:
        if Bb > 1:
            Bb = _largest_divisor_leq(B, Bb - 1)
        elif tt > 128:
            tt = max(128, (tt // 2) // 128 * 128)
        else:
            break
    return Bb, tt


def count_wrapper_forward(x_bct, W_e, b_e, W_d, b_d, *, out_dtype=None,
                          max_tile=8192):
    """x_bct: (B, C, T).  Returns (rates (B, C, T), z (B, D, T)).

    Math is always f32; I/O dtype follows x (or `out_dtype`) so callers can
    stream bf16 to halve HBM traffic.
    """
    B, C, T = x_bct.shape
    D = W_e.shape[0]                      # W_e: (D, C), W_d: (C, D)
    out_dtype = x_bct.dtype if out_dtype is None else out_dtype
    in_b = jnp.dtype(x_bct.dtype).itemsize
    out_b = jnp.dtype(out_dtype).itemsize

    # Fused decode only while the extra C/D x MXU work / C*C resident weight
    # is cheap; otherwise decode from z (serial dep is hidden by DMA anyway).
    fuse = C <= 8 * D
    f32 = jnp.float32
    if fuse:
        Wd_k = (W_d.astype(f32) @ W_e.astype(f32))                       # (C, C)
        bd_k = (W_d.astype(f32) @ b_e.astype(f32) + b_d.astype(f32)).reshape(C, 1)
    else:
        Wd_k = W_d.astype(f32)                                           # (C, D)
        bd_k = b_d.reshape(C, 1).astype(f32)
    We_k = W_e.astype(f32)
    be_k = b_e.reshape(D, 1).astype(f32)

    # VMEM budget from the actual chip (v7x: 64 MiB, v5e/v6e: 128 MiB).
    try:
        cap = int(getattr(pltpu.get_tpu_info(), "vmem_capacity_bytes", 64 << 20))
    except Exception:  # pragma: no cover - conservative fallback (v7x)
        cap = 64 << 20
    budget = cap // 2

    resident = 4 * (D * C + D + Wd_k.shape[0] * Wd_k.shape[1] + C)
    bytes_per_col = C * in_b + C * out_b + D * out_b      # per batch row, per t

    Bb, tt = _choose_tiling(B, T, bytes_per_col, resident, budget, max_tile)
    T_pad = pl.cdiv(T, tt) * tt
    x_pad = x_bct if T_pad == T else jnp.pad(
        x_bct, ((0, 0), (0, 0), (0, T_pad - T)))

    grid = (B // Bb, T_pad // tt)     # both axes embarrassingly parallel
    vmem_need = resident + 2 * Bb * tt * bytes_per_col
    vmem_limit = max(32 << 20, min(cap * 3 // 4, vmem_need + (8 << 20)))

    cost = pl.CostEstimate(
        flops=2 * B * T * (D * C + Wd_k.shape[0] * Wd_k.shape[1]),
        transcendentals=2 * B * C * T,
        bytes_accessed=B * T * bytes_per_col + resident,
    )

    rates, z = pl.pallas_call(
        _make_kernel(fuse),
        out_shape=(
            jax.ShapeDtypeStruct((B, C, T_pad), out_dtype),
            jax.ShapeDtypeStruct((B, D, T_pad), out_dtype),
        ),
        grid_spec=pl.GridSpec(
            grid=grid,
            in_specs=[
                pl.BlockSpec((Bb, C, tt), lambda b, t: (b, 0, t)),   # x slab
                pl.BlockSpec((D, C), lambda b, t: (0, 0)),           # W_e
                pl.BlockSpec((D, 1), lambda b, t: (0, 0)),           # b_e
                pl.BlockSpec(Wd_k.shape, lambda b, t: (0, 0)),       # W_f / W_d
                pl.BlockSpec((C, 1), lambda b, t: (0, 0)),           # b_f / b_d
            ],
            out_specs=(
                pl.BlockSpec((Bb, C, tt), lambda b, t: (b, 0, t)),   # rates
                pl.BlockSpec((Bb, D, tt), lambda b, t: (b, 0, t)),   # z
            ),
        ),
        compiler_params=pltpu.CompilerParams(
            dimension_semantics=("parallel", "parallel"),
            vmem_limit_bytes=int(vmem_limit)),
        cost_estimate=cost,
    )(x_pad, We_k, be_k, Wd_k, bd_k)

    if T_pad != T:
        # Padded columns hold softplus(bias) / b_e, not zeros: slice them off.
        rates = rates[:, :, :T]
        z = z[:, :, :T]
    return rates, z


if __name__ == "__main__":
    B, C, T, D = 2, 16, 256, 8

    key = jax.random.PRNGKey(0)
    kx, ke, kbe, kd, kbd = jax.random.split(key, 5)

    x = jax.random.normal(kx, (B, C, T), dtype=jnp.float32)
    # Deterministic synthetic ae_net parameters.
    W_e = jax.random.normal(ke, (D, C), dtype=jnp.float32) * 0.1
    b_e = jax.random.normal(kbe, (D,), dtype=jnp.float32) * 0.1
    W_d = jax.random.normal(kd, (C, D), dtype=jnp.float32) * 0.1
    b_d = jax.random.normal(kbd, (C,), dtype=jnp.float32) * 0.1

    def ref_forward(xf):
        z_ref = jnp.einsum("dc,bct->bdt", W_e, xf) + b_e[None, :, None]
        lr_ref = jnp.einsum("cd,bdt->bct", W_d, z_ref) + b_d[None, :, None]
        return jax.nn.softplus(lr_ref), z_ref

    # Full-precision path (exact CountWrapper semantics).
    rates, z = count_wrapper_forward(x, W_e, b_e, W_d, b_d)
    jax.block_until_ready((rates, z))
    rates_ref, z_ref = ref_forward(x)
    assert jnp.allclose(z, z_ref, atol=1e-4, rtol=1e-4), "z mismatch (f32)"
    assert jnp.allclose(rates, rates_ref, atol=1e-4, rtol=1e-4), "rates mismatch (f32)"

    # bf16 I/O path (halved HBM traffic; all math stays f32 inside the kernel).
    x16 = x.astype(jnp.bfloat16)
    rates16, z16 = count_wrapper_forward(x16, W_e, b_e, W_d, b_d)
    jax.block_until_ready((rates16, z16))
    rates_ref16, z_ref16 = ref_forward(x16.astype(jnp.float32))
    assert jnp.allclose(z16.astype(jnp.float32), z_ref16,
                        atol=3e-2, rtol=3e-2), "z mismatch (bf16)"
    assert jnp.allclose(rates16.astype(jnp.float32), rates_ref16,
                        atol=3e-2, rtol=3e-2), "rates mismatch (bf16)"

    print("KERNEL_OK")
</pallas_src>

<mosaic_0001>
module attributes {stable_mosaic.version = 11 : i64} {
  func.func @kernel(%arg0: i32, %arg1: i32, %arg2: memref<1x16x256xf32, #tpu.memory_space<vmem>>, %arg3: memref<8x16xf32, #tpu.memory_space<vmem>>, %arg4: memref<8x1xf32, #tpu.memory_space<vmem>>, %arg5: memref<16x16xf32, #tpu.memory_space<vmem>>, %arg6: memref<16x1xf32, #tpu.memory_space<vmem>>, %arg7: memref<1x16x256xf32, #tpu.memory_space<vmem>>, %arg8: memref<1x8x256xf32, #tpu.memory_space<vmem>>) attributes {dimension_semantics = [#tpu.dimension_semantics<parallel>, #tpu.dimension_semantics<parallel>], iteration_bounds = array<i64: 2, 1>, scalar_prefetch = 0 : i64, scratch_operands = 0 : i64, tpu.core_type = #tpu.core_type<tc>, window_params = [{transform_indices = @transform_0, window_bounds = array<i64: 1, 16, 256>}, {pipeline_mode = #tpu.pipeline_mode<synchronous>, transform_indices = @transform_1, window_bounds = array<i64: 8, 16>}, {pipeline_mode = #tpu.pipeline_mode<synchronous>, transform_indices = @transform_2, window_bounds = array<i64: 8, 1>}, {pipeline_mode = #tpu.pipeline_mode<synchronous>, transform_indices = @transform_3, window_bounds = array<i64: 16, 16>}, {pipeline_mode = #tpu.pipeline_mode<synchronous>, transform_indices = @transform_4, window_bounds = array<i64: 16, 1>}, {transform_indices = @transform_5, window_bounds = array<i64: 1, 16, 256>}, {transform_indices = @transform_6, window_bounds = array<i64: 1, 8, 256>}]} {
    %c0 = arith.constant 0 : index
    %c0_0 = arith.constant 0 : index
    %0 = vector.load %arg3[%c0, %c0_0] : memref<8x16xf32, #tpu.memory_space<vmem>>, vector<8x16xf32>
    %c0_1 = arith.constant 0 : index
    %c0_2 = arith.constant 0 : index
    %1 = vector.load %arg4[%c0_1, %c0_2] : memref<8x1xf32, #tpu.memory_space<vmem>>, vector<8x1xf32>
    %c0_3 = arith.constant 0 : index
    %c0_4 = arith.constant 0 : index
    %2 = vector.load %arg5[%c0_3, %c0_4] : memref<16x16xf32, #tpu.memory_space<vmem>>, vector<16x16xf32>
    %c0_5 = arith.constant 0 : index
    %c0_6 = arith.constant 0 : index
    %3 = vector.load %arg6[%c0_5, %c0_6] : memref<16x1xf32, #tpu.memory_space<vmem>>, vector<16x1xf32>
    %c0_7 = arith.constant 0 : index
    %c0_8 = arith.constant 0 : index
    %c0_9 = arith.constant 0 : index
    %4 = vector.load %arg2[%c0_7, %c0_8, %c0_9] : memref<1x16x256xf32, #tpu.memory_space<vmem>>, vector<1x16x256xf32>
    %5 = vector.shape_cast %4 : vector<1x16x256xf32> to vector<16x256xf32>
    %cst = arith.constant dense<0.000000e+00> : vector<8x256xf32>
    %6 = tpu.matmul %0, %5, %cst {dimension_numbers = #tpu.dot_dimension_numbers<[1], [0], [0], [1], [0, 0, 1, 1], [], []>} : vector<8x16xf32>, vector<16x256xf32>, vector<8x256xf32> -> vector<8x256xf32>
    %7 = vector.broadcast %1 : vector<8x1xf32> to vector<8x256xf32>
    %8 = arith.addf %6, %7 : vector<8x256xf32>
    %cst_10 = arith.constant dense<0.000000e+00> : vector<16x256xf32>
    %9 = tpu.matmul %2, %5, %cst_10 {dimension_numbers = #tpu.dot_dimension_numbers<[1], [0], [0], [1], [0, 0, 1, 1], [], []>} : vector<16x16xf32>, vector<16x256xf32>, vector<16x256xf32> -> vector<16x256xf32>
    %10 = vector.broadcast %3 : vector<16x1xf32> to vector<16x256xf32>
    %11 = arith.addf %9, %10 : vector<16x256xf32>
    %cst_11 = arith.constant 2.000000e+01 : f32
    %12 = vector.broadcast %cst_11 : f32 to vector<16x256xf32>
    %13 = arith.cmpf ogt, %11, %12 : vector<16x256xf32>
    %cst_12 = arith.constant 2.000000e+01 : f32
    %14 = vector.broadcast %cst_12 : f32 to vector<16x256xf32>
    %15 = arith.minimumf %11, %14 : vector<16x256xf32>
    %16 = math.exp %15 : vector<16x256xf32>
    %17 = math.log1p %16 : vector<16x256xf32>
    %18 = arith.select %13, %11, %17 : vector<16x256xi1>, vector<16x256xf32>
    %c0_13 = arith.constant 0 : index
    %c0_14 = arith.constant 0 : index
    %c0_15 = arith.constant 0 : index
    %19 = vector.load %arg7[%c0_13, %c0_14, %c0_15] : memref<1x16x256xf32, #tpu.memory_space<vmem>>, vector<1x16x256xf32>
    %20 = vector.shape_cast %19 : vector<1x16x256xf32> to vector<16x256xf32>
    %21 = vector.shape_cast %18 : vector<16x256xf32> to vector<1x16x256xf32>
    tpu.vector_store %arg7[%c0_13, %c0_14, %c0_15], %21 {strides = array<i32>} : memref<1x16x256xf32, #tpu.memory_space<vmem>>, vector<1x16x256xf32>,
    %c0_16 = arith.constant 0 : index
    %c0_17 = arith.constant 0 : index
    %c0_18 = arith.constant 0 : index
    %22 = vector.load %arg8[%c0_16, %c0_17, %c0_18] : memref<1x8x256xf32, #tpu.memory_space<vmem>>, vector<1x8x256xf32>
    %23 = vector.shape_cast %22 : vector<1x8x256xf32> to vector<8x256xf32>
    %24 = vector.shape_cast %8 : vector<8x256xf32> to vector<1x8x256xf32>
    tpu.vector_store %arg8[%c0_16, %c0_17, %c0_18], %24 {strides = array<i32>} : memref<1x8x256xf32, #tpu.memory_space<vmem>>, vector<1x8x256xf32>,
    return
  }
  func.func @transform_0(%arg0: i32, %arg1: i32) -> (i32, i32, i32) {
    %c0_i32 = arith.constant 0 : i32
    %c0_i32_0 = arith.constant 0 : i32
    return %arg0, %c0_i32, %arg1 : i32, i32, i32
  }
  func.func @transform_1(%arg0: i32, %arg1: i32) -> (i32, i32) {
    %c0_i32 = arith.constant 0 : i32
    %c0_i32_0 = arith.constant 0 : i32
    %c0_i32_1 = arith.constant 0 : i32
    return %c0_i32, %c0_i32_0 : i32, i32
  }
  func.func @transform_2(%arg0: i32, %arg1: i32) -> (i32, i32) {
    %c0_i32 = arith.constant 0 : i32
    %c0_i32_0 = arith.constant 0 : i32
    %c0_i32_1 = arith.constant 0 : i32
    return %c0_i32, %c0_i32_0 : i32, i32
  }
  func.func @transform_3(%arg0: i32, %arg1: i32) -> (i32, i32) {
    %c0_i32 = arith.constant 0 : i32
    %c0_i32_0 = arith.constant 0 : i32
    %c0_i32_1 = arith.constant 0 : i32
    return %c0_i32, %c0_i32_0 : i32, i32
  }
  func.func @transform_4(%arg0: i32, %arg1: i32) -> (i32, i32) {
    %c0_i32 = arith.constant 0 : i32
    %c0_i32_0 = arith.constant 0 : i32
    %c0_i32_1 = arith.constant 0 : i32
    return %c0_i32, %c0_i32_0 : i32, i32
  }
  func.func @transform_5(%arg0: i32, %arg1: i32) -> (i32, i32, i32) {
    %c0_i32 = arith.constant 0 : i32
    %c0_i32_0 = arith.constant 0 : i32
    return %arg0, %c0_i32, %arg1 : i32, i32, i32
  }
  func.func @transform_6(%arg0: i32, %arg1: i32) -> (i32, i32, i32) {
    %c0_i32 = arith.constant 0 : i32
    %c0_i32_0 = arith.constant 0 : i32
    return %arg0, %c0_i32, %arg1 : i32, i32, i32
  }
}

</mosaic_0001>

<bundles_post_ra>
// kernel: tpu_custom_call.1
= control target key start
LH: loop header
LB: loop body
LE: loop exit
PB: predicated region body
PF: predicated region fallthrough
CT: control target
= control target key end

     0   :  { %12 = vsyncpa [#allocation3], 0  ;;  %s1229_s0 = inlined_call_operand.hbm [shape: f32[2,16,256], index: 0, kind: input, shape index: {}]   ;;  %s1230_s1 = inlined_call_operand.vmem [shape: f32[8,16], index: 1, kind: input, shape index: {}]   ;;  %s1231_s2 = inlined_call_operand.vmem [shape: f32[8,1], index: 2, kind: input, shape index: {}]   ;;  %s1232_s3 = inlined_call_operand.vmem [shape: f32[16,16], index: 3, kind: input, shape index: {}]   ;;  %s1233_s4 = inlined_call_operand.vmem [shape: f32[16,1], index: 4, kind: input, shape index: {}]   ;;  %s1234_s5 = inlined_call_operand.hbm [shape: f32[2,16,256], index: 5, kind: output, shape index: {0}]   ;;  %s1235_s6 = inlined_call_operand.hbm [shape: f32[2,8,256], index: 6, kind: output, shape index: {1}]  }
   0x1   :  { %14 = vsyncpa [#allocation3 + $0x1], 0 }
   0x2   :  { %15 = vsyncpa [#allocation4], 0 }
   0x3   :  { %17 = vsyncpa [#allocation4 + $0x1], 0 }
   0x4   :  { %18 = vsyncpa [#allocation7], 0 }
   0x5   :  { %20 = vsyncpa [#allocation7 + $0x1], 0  ;;  %s1008_s21 = smov 0   ;;  %s1010_s22 = smov 0  }
   0x6   :  { %s1012_s23 = smov 0   ;;  %s1014_s24 = smov 0  }
   0x7   :  { %s1016_s25 = smov 0   ;;  %s1018_s26 = smov 0  }
   0x8 LB: > { %s708_s27 = sadd.s32 4294967295, %s962_s26   ;;  %s709_s28 = sadd.s32 4294967294, %s962_s26   ;;  %s962_s26 = sphi %s1018_s26, %s26_s26   ;;  %s958_s25 = sphi %s1016_s25, %s1246_s25   ;;  %s954_s24 = sphi %s1014_s24, %s1245_s24   ;;  %s950_s23 = sphi %s1012_s23, %s1244_s23   ;;  %s946_s22 = sphi %s1010_s22, %s1243_s22   ;;  %s942_s21 = sphi %s1008_s21, %s1242_s21  }
   0x9   : > { %s38_s29 = sadd.s32 1, %s958_s25  ;;  %s47_s30 = sadd.s32 1, %s950_s23 }
   0xa   : > { %p40_p0 = scmp.ge.s32.totalorder %s38_s29, 2  ;;  %p54_p1 = scmp.ne.s32.totalorder %s950_s23, %s946_s22 }
   0xb   : > { %p55_p2 = scmp.eq.s32.totalorder %s962_s26, 0  ;;  %p60_p3 = scmp.ne.s32.totalorder %s946_s22, %s942_s21 }
   0xc   : > { %s1248_s29 = smov (%p40_p0, %s38_s29), 0  ;;  %p61_p5 = scmp.eq.s32.totalorder %s708_s27, 0 }
   0xd   : > { %p1049_p4 = por %p55_p2, %p54_p1  ;;  %s42_s8 = ssub.s32 %s958_s25, %s1248_s29 }
   0xe   : > { %p170_p6 = scmp.eq.s32.totalorder %s708_s27, 1  ;;  %p45_p7 = scmp.eq.s32.totalorder %s42_s8, 0 }
   0xf   : > { %p1055_p8 = por %p61_p5, %p60_p3  ;;  %p176_p10 = scmp.eq.s32.totalorder %s709_s28, 1 }
  0x10   : > { %p1059_p9 = por %p170_p6, %p54_p1  ;;  %p750_p13 = scmp.lt.s32.totalorder %s962_s26, 2 }
  0x11   : > { %s1064_s11 = scalar_select %p45_p7, %s950_s23, %s47_s30  }
  0x12   : > { %p1066_p11 = por %p176_p10, %p60_p3  ;;  %s236_s13 = sand.u32 1, %s950_s23  }
  0x13   : > { %s712_s14 = sshll.u32 %s236_s13, 5  ;;  %s730_s15 = sshll.u32 %s958_s25, 9 }
  0x14   : > { %s248_s18 = scalar_lea.hbm %s1229_s0, %s730_s15  ;;  %s240_s19 = scalar_lea.vmem [#allocation2], %s712_s14 }
  0x15   : > { %s249_s20 = sshll.u32 %s240_s19, 4  ;;  %p1079_p0 = pnand %p750_p13, %p1049_p4  ;;  %s250_s20 = int_to_ptr.vmem [resolvable:$true] %s249_s20 }
  0x16   : > { %p715_p1 = scmp.ge.s32.totalorder %s962_s26, 1  ;;  %s237_s28 = scalar_lea.sflag [#allocation3], %s236_s13 }
  0x17   : > { %p826_p2 = pneg %p1079_p0  ;;  %s837_s30 = scalar_lea.vmem %s250_s20, 512 }
  0x18   : > { %p838_p3 = scmp.ne.s32.totalorder %s250_s20, %s837_s30  ;;  %s964_s8 = smov [#allocation2]  }
  0x19   : > { %s842_s16 = sshll.u32 %s964_s8, 4  ;;  %s843_s16 = int_to_ptr.vmem [resolvable:$false] %s842_s16 }
  0x1a   : > { %p840_p5 = pnand %p838_p3, %p826_p2  ;;  %s844_s14 = scalar_lea.vmem %s843_s16, 1024 }
  0x1b   : > { %p845_p7 = scmp.lt.s32.totalorder %s250_s20, %s843_s16  ;;  %p846_p10 = scmp.lt.s32.totalorder %s844_s14, %s837_s30 }
  0x1c   : > { %p841_p6 = pneg %p840_p5 }
  0x1d   : > { %p847_p12 = por %p846_p10, %p845_p7 }
  0x1f   : > { %p848_p4 = pnand %p847_p12, %p841_p6 }
  0x21   : > { %851 = shalt.err (!%p848_p4)
}
  0x22   : > { %s965_s7 = smov 256   ;;  %s966_s13 = smov 16  }
  0x23   : > { %742 = dma.hbm_to_vmem [thread:$0]  (!%p1079_p0), %s248_s18, 512, %s250_s20, %s237_s28, %s965_s7, %s965_s7, %s966_s13  }
  0x24   : > { %p257_p13 = scmp.lt.s32.totalorder %s962_s26, 3 }
  0x26   : > { %p258_p2 = pnand %p715_p1, %p257_p13 }
  0x27   : > { %s1092_s15 = sand.u32 (!%p258_p2), 1, %s946_s22  }
  0x28   : > { %261 = sbr.rel (%p258_p2) target bundleno = 317 (0x13d), region = 40  ;;  %s716_s17 = sshll.u32 (!%p258_p2), %s1092_s15, 5 }
  0x29   : > { %s264_s19 = scalar_lea.sflag (!%p258_p2), [#allocation3], %s1092_s15  ;;  %s267_s30 = scalar_lea.vmem (!%p258_p2), [#allocation2], %s716_s17 }
  0x2d   : > { %929 = dma.done.wait (%p1055_p8), %s264_s19, 512  }
  0x2e   : > { %931 = vsyncadd (%p1055_p8), %s264_s19, 4294966784  ;;  %v967_v0 = vmov 0.0   ;;  %v968_v1 = vmov 0   ;;  %v313_v2 = vld [vmem:[%s267_s30 + $0x18] sm:$0xff]  ;;  %v312_v3 = vld [vmem:[%s267_s30 + $0x10] sm:$0xff]  ;;  %vm319_vm0 = vcmask 130048  }
  0x2f   : > { %474 = vmatprep.mubr.f32.mxu1 %v967_v0  ;;  %387 = vmatprep.mubr.f32.mxu0 %v967_v0  ;;  %v311_v4 = vld [vmem:[%s267_s30 + $0x8] sm:$0xff]  ;;  %v310_v5 = vld [vmem:[%s267_s30] sm:$0xff]  ;;  %s718_s18 = sshll.u32 %s1092_s15, 4  ;;  %s732_s20 = sshll.u32 %s954_s24, 8 }
  0x30   : > { %806 = vset.pattern.permute.xlu0 %v968_v1  ;;  %807 = vset.pattern.permute.xlu1 %v968_v1  ;;  %v306_v6 = vld [vmem:[%s1232_s3] sm:$0xff]  ;;  %v307_v10 = vld [vmem:[%s1232_s3 + $0x8] sm:$0xff]  ;;  %s300_s9 = scalar_lea.vmem [#allocation6], %s718_s18  ;;  %s1133_s16 = scalar_lea.hbm %s1235_s6, %s732_s20 }
  0x31   : > { %438 = vmatprep.subr.mxu1 %v313_v2  ;;  %351 = vmatprep.subr.mxu0 %v313_v2  ;;  %v304_v7 = vld [vmem:[%s1230_s1] sm:$0xff]  ;;  %v309_v11 = vld [vmem:[%s1233_s4 + $0x8] sm:$0xff]  ;;  %s589_s27 = sshll.u32 %s300_s9, 4  ;;  %s555_s14 = scalar_lea.sflag [#allocation7], %s1092_s15  ;;  %s1135_s27 = int_to_ptr.vmem [resolvable:$true] %s589_s27 }
  0x32   : > { %439 = vmatpush1.msra.mxu1 %v312_v3  ;;  %352 = vmatpush1.msra.mxu0 %v312_v3  ;;  %v308_v8 = vld [vmem:[%s1233_s4] sm:$0xff]  ;;  %s852_s7 = scalar_lea.vmem %s1135_s27, 256  ;;  %s969_s13 = smov [#allocation6]  }
  0x33   : > { %440 = vmatprep.subr.mxu1 %v311_v4  ;;  %353 = vmatprep.subr.mxu0 %v311_v4  ;;  %v305_v9 = vld [vmem:[%s1231_s2] sm:$0xff]  ;;  %p853_p8 = scmp.ne.s32.totalorder %s1135_s27, %s852_s7  ;;  %s856_s19 = sshll.u32 %s969_s13, 4  ;;  %s857_s19 = int_to_ptr.vmem [resolvable:$false] %s856_s19 }
  0x34   : > { %441 = vmatpush1.msra.mxu1 %v310_v5  ;;  %354 = vmatpush1.msra.mxu0 %v310_v5  ;;  %s858_s30 = scalar_lea.vmem %s857_s19, 512  ;;  %p859_p1 = scmp.lt.s32.totalorder %s1135_s27, %s857_s19 }
  0x35   : > { %720 = vmatmul.mubr.msk.f32.vlgmr.msra.gmra.mxu1 %vm319_vm0, %v306_v6  ;;  %719 = vmatmul.mubr.msk.f32.vlgmr.msra.gmra.mxu0 %vm319_vm0, %v304_v7  ;;  %p854_p12 = pnand %p853_p8, %p1059_p9  ;;  %p860_p3 = scmp.lt.s32.totalorder %s858_s30, %s852_s7 }
  0x36   : > { %480 = vmatprep.mubr.f32.mxu1 %v967_v0  ;;  %396 = vperm.xlu0 %806, %v308_v8  }
  0x37   : > { %316 = vperm.xlu1 %807, %v305_v9   ;;  %p855_p0 = pneg %p854_p12  ;;  %p861_p5 = por %p860_p3, %p859_p1 }
  0x39   : > { %721 = vmatmul.mubr.msk.f32.gmra.mxu1 %vm319_vm0, %v307_v10  ;;  %p862_p6 = pnand %p861_p5, %p855_p0 }
  0x3a   : > { %401 = vperm.xlu0 %806, %v309_v11  }
  0xb1   : > { %v397_v12 = vpop.permute.xlu0 %396 }
  0xb2   : > { %v317_v13 = vpop.permute.xlu1 %316 }
  0xb5   : > { %v402_v23 = vpop.permute.xlu0 %401 }
  0xf5   : > { %v476_v14 = vpop.f32.mrf.mxu1  ;;  %v389_v15 = vpop.f32.mrf.mxu0 }
  0xf6   : > { %v1125_v16 = vadd.f32 %v476_v14, %v397_v12  ;;  %v390_v17 = vadd.f32 %v389_v15, %v317_v13 }
  0xf7   : > { %v478_v18 = vpop.f32.mrf.mxu1  ;;  %v391_v19 = vpop.f32.mrf.mxu0 }
  0xf8   : > { %v491_v20 = vmin.f32 %v1125_v16, 20.0  ;;  %v1128_v21 = vadd.f32 %v478_v18, %v397_v12  ;;  %547 = vst [vmem:[%s300_s9] sm:$0xff] %v390_v17  ;;  %v392_v22 = vadd.f32 %v391_v19, %v317_v13 }
  0xf9   : > { %v482_v24 = vpop.f32.mrf.mxu1 }
  0xfa   : > { %v495_v25 = vmul.f32 1.442695, %v491_v20  ;;  %v492_v26 = vmin.f32 %v1128_v21, 20.0  ;;  %v1138_v27 = vadd.f32 %v482_v24, %v402_v23  ;;  %548 = vst [vmem:[%s300_s9 + $0x8] sm:$0xff] %v392_v22 }
  0xfb   : > { %v484_v28 = vpop.f32.mrf.mxu1 }
  0xfc   : > { %865 = shalt.err (!%p862_p6)
}
  0xfd   : > { %s866_s18 = scalar_lea.hbm %s1133_s16, 256  ;;  %s870_s28 = scalar_lea.hbm %s1235_s6, 512 }
  0xfe   : > { %p867_p7 = scmp.ne.s32.totalorder %s1133_s16, %s866_s18  ;;  %p871_p13 = scmp.lt.s32.totalorder %s1133_s16, %s1235_s6 }
  0xff   : > { %p872_p2 = scmp.lt.s32.totalorder %s870_s28, %s866_s18 }
 0x100   : > { %p868_p10 = pnand %p867_p7, %p1059_p9 }
 0x101   : > { %p873_p8 = por %p872_p2, %p871_p13 }
 0x102   : > { %p869_p4 = pneg %p868_p10 }
 0x104   : > { %p874_p12 = pnand %p873_p8, %p869_p4 }
 0x106   : > { %877 = shalt.err (!%p874_p12)
}
 0x107   : > { %736 = dma.vmem_to_hbm [thread:$0]  (%p1059_p9), %s1135_s27, 256, %s1133_s16, %s555_s14   ;;  %808 = vpow2.f32 %v495_v25  ;;  %v497_v29 = vmul.f32 1.442695, %v492_v26  ;;  %v493_v30 = vmin.f32 %v1138_v27, 20.0  ;;  %v1162_v31 = vadd.f32 %v484_v28, %v402_v23 }
 0x108   : > { %vm487_vm2 = vcmp.gt.f32.partialorder %v1125_v16, 20.0  ;;  %vm488_vm3 = vcmp.gt.f32.partialorder %v1128_v21, 20.0  ;;  %s293_s27 = scalar_lea.vmem [#allocation5], %s716_s17  ;;  %s731_s14 = sshll.u32 %s954_s24, 9  ;;  %vm489_vm6 = vcmp.gt.f32.partialorder %v1138_v27, 20.0 }
 0x109   : > { %810 = vpow2.f32 %v497_v29  ;;  %v499_v32 = vmul.f32 1.442695, %v493_v30  ;;  %v494_v33 = vmin.f32 %v1162_v31, 20.0  ;;  %s570_s16 = sshll.u32 %s293_s27, 4  ;;  %s1179_s7 = scalar_lea.hbm %s1234_s5, %s731_s14  ;;  %vm490_vm8 = vcmp.gt.f32.partialorder %v1162_v31, 20.0  ;;  %s1173_s16 = int_to_ptr.vmem [resolvable:$true] %s570_s16 }
 0x10a   : > { %s550_s19 = scalar_lea.sflag [#allocation4], %s1092_s15  ;;  %s878_s30 = scalar_lea.vmem %s1173_s16, 512 }
 0x10b   : > { %812 = vpow2.f32 %v499_v32  ;;  %v501_v34 = vmul.f32 1.442695, %v494_v33  ;;  %p879_p0 = scmp.ne.s32.totalorder %s1173_s16, %s878_s30  ;;  %s970_s18 = smov [#allocation5]  }
 0x10c   : > { %s882_s20 = sshll.u32 %s970_s18, 4  ;;  %s883_s20 = int_to_ptr.vmem [resolvable:$false] %s882_s20 }
 0x10d   : > { %814 = vpow2.f32 %v501_v34  ;;  %p880_p1 = pnand %p879_p0, %p1059_p9  ;;  %s884_s9 = scalar_lea.vmem %s883_s20, 1024 }
 0x10e   : > { %p885_p5 = scmp.lt.s32.totalorder %s1173_s16, %s883_s20  ;;  %p886_p6 = scmp.lt.s32.totalorder %s884_s9, %s878_s30 }
 0x10f   : > { %p881_p3 = pneg %p880_p1 }
 0x110   : > { %p887_p7 = por %p886_p6, %p885_p5 }
 0x112   : > { %p888_p10 = pnand %p887_p7, %p881_p3 }
 0x114   : > { %v809_v35 = vpop.eup %808 }
 0x115   : > { %v503_v36 = vadd.f32 1.0, %v809_v35  ;;  %v506_v43 = vmul.f32 -0.5, %v809_v35  ;;  %v509_v47 = vand.u32 2147483647, %v809_v35 }
 0x116   : > { %v811_v37 = vpop.eup %810 }
 0x117   : > { %816 = vlog2.f32 %v503_v36  ;;  %v512_v38 = vadd.f32 1.0, %v811_v37  ;;  %v515_v44 = vmul.f32 -0.5, %v811_v37  ;;  %v507_v45 = vadd.f32 1.0, %v506_v43 }
 0x118   : > { %v813_v39 = vpop.eup %812  ;;  %v518_v50 = vand.u32 2147483647, %v811_v37  ;;  %vm510_vm1 = vcmp.lt.f32.partialorder %v509_v47, 0.0004427343 }
 0x119   : > { %818 = vlog2.f32 %v512_v38  ;;  %v521_v40 = vadd.f32 1.0, %v813_v39  ;;  %v524_v46 = vmul.f32 -0.5, %v813_v39  ;;  %v516_v48 = vadd.f32 1.0, %v515_v44 }
 0x11a   : > { %v815_v41 = vpop.eup %814  ;;  %v508_v53 = vmul.f32 %v809_v35, %v507_v45  ;;  %v527_v56 = vand.u32 2147483647, %v813_v39  ;;  %vm519_vm4 = vcmp.lt.f32.partialorder %v518_v50, 0.0004427343 }
 0x11b   : > { %820 = vlog2.f32 %v521_v40  ;;  %v530_v42 = vadd.f32 1.0, %v815_v41  ;;  %v533_v51 = vmul.f32 -0.5, %v815_v41  ;;  %v525_v54 = vadd.f32 1.0, %v524_v46 }
 0x11c   : > { %v517_v59 = vmul.f32 %v811_v37, %v516_v48  ;;  %v536_v2 = vand.u32 2147483647, %v815_v41  ;;  %vm528_vm5 = vcmp.lt.f32.partialorder %v527_v56, 0.0004427343 }
 0x11d   : > { %822 = vlog2.f32 %v530_v42  ;;  %v534_v62 = vadd.f32 1.0, %v533_v51  ;;  %v526_v1 = vmul.f32 %v813_v39, %v525_v54 }
 0x11e   : > { %vm537_vm7 = vcmp.lt.f32.partialorder %v536_v2, 0.0004427343 }
 0x11f   : > { %v535_v8 = vmul.f32 %v815_v41, %v534_v62 }
 0x124   : > { %v817_v49 = vpop.eup %816 }
 0x125   : > { %v505_v52 = vmul.f32 0.6931472, %v817_v49 }
 0x126   : > { %v819_v55 = vpop.eup %818 }
 0x127   : > { %v511_v57 = vsel %vm510_vm1, %v508_v53, %v505_v52  ;;  %v514_v58 = vmul.f32 0.6931472, %v819_v55 }
 0x128   : > { %v821_v60 = vpop.eup %820  ;;  %v539_v61 = vsel %vm487_vm2, %v1125_v16, %v511_v57 }
 0x129   : > { %543 = vst [vmem:[%s293_s27] sm:$0xff] %v539_v61  ;;  %v520_v63 = vsel %vm519_vm4, %v517_v59, %v514_v58  ;;  %v523_v0 = vmul.f32 0.6931472, %v821_v60 }
 0x12a   : > { %v540_v3 = vsel %vm488_vm3, %v1128_v21, %v520_v63  ;;  %v823_v4 = vpop.eup %822 }
 0x12b   : > { %544 = vst [vmem:[%s293_s27 + $0x8] sm:$0xff] %v540_v3  ;;  %v529_v5 = vsel %vm528_vm5, %v526_v1, %v523_v0  ;;  %v532_v7 = vmul.f32 0.6931472, %v823_v4 }
 0x12c   : > { %v541_v6 = vsel %vm489_vm6, %v1138_v27, %v529_v5 }
 0x12d   : > { %545 = vst [vmem:[%s293_s27 + $0x10] sm:$0xff] %v541_v6  ;;  %v538_v9 = vsel %vm537_vm7, %v535_v8, %v532_v7 }
 0x12e   : > { %v542_v10 = vsel %vm490_vm8, %v1162_v31, %v538_v9 }
 0x12f   : > { %546 = vst [vmem:[%s293_s27 + $0x18] sm:$0xff] %v542_v10 }
 0x130   : > { %891 = shalt.err (!%p888_p10)
}
 0x131   : > { %s892_s28 = scalar_lea.hbm %s1179_s7, 512  ;;  %s896_s27 = scalar_lea.hbm %s1234_s5, 1024 }
 0x132   : > { %p893_p4 = scmp.ne.s32.totalorder %s1179_s7, %s892_s28  ;;  %p897_p8 = scmp.lt.s32.totalorder %s1179_s7, %s1234_s5 }
 0x133   : > { %p898_p12 = scmp.lt.s32.totalorder %s896_s27, %s892_s28 }
 0x134   : > { %p894_p13 = pnand %p893_p4, %p1059_p9 }
 0x135   : > { %p899_p0 = por %p898_p12, %p897_p8 }
 0x136   : > { %p895_p2 = pneg %p894_p13 }
 0x138   : > { %p900_p1 = pnand %p899_p0, %p895_p2 }
 0x13a   : > { %903 = shalt.err (!%p900_p1)
}
 0x13b   : > { %s971_s24 = smov 256   ;;  %s972_s30 = smov 16  }
 0x13c   : > { %735 = dma.vmem_to_hbm [thread:$0]  (%p1059_p9), %s1173_s16, 512, %s1179_s7, %s550_s19, %s971_s24, %s971_s24, %s972_s30  }
 0x13d PF: > { %s601_s18 = sand.u32 1, %s942_s21   ;;  %p1241_p3 = scmp.ge.s32.totalorder %s962_s26, 2 }
 0x13e   : > { %s602_s20 = scalar_lea.sflag [#allocation4], %s601_s18 }
 0x13f   : > { %p744_p5 = pnand %p1241_p3, %p1066_p11 }
 0x141   : > { %p745_p6 = pneg %p744_p5 }
 0x143   : > { %933 = dma.done.wait (%p745_p6), %s602_s20, 512  }
 0x144   : > { %935 = vsyncadd (%p745_p6), %s602_s20, 4294966784  ;;  %s611_s9 = scalar_lea.sflag [#allocation7], %s601_s18 }
 0x145   : > { %937 = dma.done.wait (%p745_p6), %s611_s9, 256  }
 0x146   : > { %939 = vsyncadd (%p745_p6), %s611_s9, 4294967040  ;;  %s26_s26 = sadd.s32 1, %s962_s26   ;;  %s1242_s21 = smov %s946_s22 }
 0x147   : > { %p23_p7 = scmp.ge.s32.totalorder %s26_s26, 4   ;;  %s1243_s22 = smov %s950_s23 }
 0x148   : > { %s1244_s23 = smov %s1064_s11  ;;  %s1245_s24 = smov %s958_s25 }
 0x149   : > { %s1246_s25 = smov %s1248_s29  ;;  %25 = sbr.rel (!%p23_p7) target bundleno = 8 (0x8), region = 102 }
 0x14e   :  { %616 = vsyncpa [#allocation3], 1 }
 0x14f   :  { %618 = vsyncpa [#allocation3 + $0x1], 1 }
 0x150   :  { %619 = vsyncpa [#allocation4], 1 }
 0x151   :  { %621 = vsyncpa [#allocation4 + $0x1], 1 }
 0x152   :  { %622 = vsyncpa [#allocation7], 1 }
 0x153   :  { %624 = vsyncpa [#allocation7 + $0x1], 1 }

</bundles_post_ra>
